<compile_context>
chip_gen: v7x
topology: tpu7x:2x2x1
jax: 0.10.0
libtpu: 0.0.40
codegen_flags: <defaults>
</compile_context>

<pallas_src>
import functools
import math

import jax
import jax.numpy as jnp
from jax.experimental import pallas as pl
from jax.experimental.pallas import tpu as pltpu


# ---------------------------------------------------------------------------
# helpers
# ---------------------------------------------------------------------------
def _round_up(x, m):
    return ((x + m - 1) // m) * m


def _sublane(dtype):
    # rows per packed sublane group for the dtype (f32->8, bf16->16, int8->32)
    return {4: 8, 2: 16, 1: 32}.get(jnp.dtype(dtype).itemsize, 8)


def _vmem_budget():
    """Generation-aware scoped-VMEM budget in bytes (leaves Mosaic headroom)."""
    try:
        cap = int(pltpu.get_tpu_info().vmem_capacity_bytes)
    except Exception:
        cap = 64 << 20  # assume the smallest generation (v7x: 64 MiB per core)
    # ~12 MiB headroom for internal scratch/semaphores; never ask for the full
    # physical VMEM on v7x, and cap at ~100 MiB on the 128 MiB parts.
    return int(max(min(cap - (12 << 20), 100 << 20), 32 << 20))


def _fit_row_block(n, sub, pref, footprint, budget, headroom=8 << 20):
    """Largest sublane-aligned row block <= pref whose footprint fits budget."""
    rb = max(sub, min(pref, _round_up(n, sub)))
    while rb > sub and footprint(rb) + headroom > budget:
        rb = max(sub, _round_up(rb // 2, sub))
    return rb


def _vmem_limit(need, budget):
    return int(min(max(need + (8 << 20), 32 << 20), budget))


# ---------------------------------------------------------------------------
# kernel 1: fused Q/K/V projection  (weights pre-transposed to [in, out])
# ---------------------------------------------------------------------------
def _qkv_kernel(x_ref, wq_ref, bq_ref, wk_ref, bk_ref, wv_ref, bv_ref,
                q_ref, k_ref, v_ref):
    x = x_ref[...]  # [rb, H] in native dtype (bf16 stays bf16 on the MXU)

    def proj(w_ref, b_ref):
        y = jnp.dot(x, w_ref[...], preferred_element_type=jnp.float32)  # [rb, H]
        return y + b_ref[...].astype(jnp.float32)

    q_ref[...] = proj(wq_ref, bq_ref).astype(q_ref.dtype)
    k_ref[...] = proj(wk_ref, bk_ref).astype(k_ref.dtype)
    v_ref[...] = proj(wv_ref, bv_ref).astype(v_ref.dtype)


def qkv_projection(x, wq_t, bq, wk_t, bk, wv_t, bv, *, budget, row_block=512):
    """x: [N, H]; wq_t/wk_t/wv_t: [H, H] already in [in, out] layout."""
    n, h = x.shape
    isz = jnp.dtype(x.dtype).itemsize
    sub = _sublane(x.dtype)
    w_bytes = 2 * 3 * (h * h + h) * isz  # weights + biases (default double-buffered)

    def footprint(rb):
        act = 2 * rb * h * isz + 2 * 3 * rb * h * isz  # x + q/k/v tiles (2-buf)
        tmp = 3 * rb * h * 4                           # f32 in-kernel intermediates
        return w_bytes + act + tmp

    rb = _fit_row_block(n, sub, row_block, footprint, budget)

    row_spec = pl.BlockSpec((rb, h), lambda i: (i, 0))
    w_spec = pl.BlockSpec((h, h), lambda i: (0, 0))    # grid-invariant (no re-DMA)
    vec_spec = pl.BlockSpec((1, h), lambda i: (0, 0))  # grid-invariant

    q, k, v = pl.pallas_call(
        _qkv_kernel,
        out_shape=tuple(jax.ShapeDtypeStruct((n, h), x.dtype) for _ in range(3)),
        grid_spec=pltpu.PrefetchScalarGridSpec(
            num_scalar_prefetch=0,
            grid=(pl.cdiv(n, rb),),
            in_specs=[row_spec, w_spec, vec_spec, w_spec, vec_spec, w_spec, vec_spec],
            out_specs=[row_spec, row_spec, row_spec],
        ),
        compiler_params=pltpu.CompilerParams(
            dimension_semantics=("parallel",),
            vmem_limit_bytes=_vmem_limit(footprint(rb), budget)),
    )(x, wq_t, bq.reshape(1, h), wk_t, bk.reshape(1, h), wv_t, bv.reshape(1, h))
    return q, k, v


# ---------------------------------------------------------------------------
# kernel 2: attention directly on the flat [N, H] layout
#   grid = (batch, head_block, q_tile); K/V blocks are q-tile invariant.
# ---------------------------------------------------------------------------
def _attention_kernel(q_ref, k_ref, v_ref, mask_ref, o_ref,
                      *, heads_per_block, head_dim, scale):
    mask = mask_ref[...].astype(jnp.float32)  # [1, S] additive (0 / -10000)

    ctx_parts = []
    for hh in range(heads_per_block):
        lo, hi = hh * head_dim, (hh + 1) * head_dim
        # fold 1/sqrt(d) into q: touches tq*d elements instead of tq*S scores
        qh = q_ref[:, lo:hi] * scale
        kh = k_ref[:, lo:hi]
        vh = v_ref[:, lo:hi]

        # scores = (q*scale) @ k^T + mask, f32 accumulation on the MXU
        s = jax.lax.dot_general(qh, kh, (((1,), (1,)), ((), ())),
                                preferred_element_type=jnp.float32)  # [tq, S]
        s = s + mask

        # numerically-stable softmax; reciprocal goes to the EUP slot
        m = jnp.max(s, axis=-1, keepdims=True)
        p = jnp.exp(s - m)
        denom = jnp.sum(p, axis=-1, keepdims=True)
        p = p * pl.reciprocal(denom, approx=True)

        # TODO(synk): attention-probs dropout is identity at inference (no RNG mask).

        ctx_parts.append(jnp.dot(p.astype(vh.dtype), vh,
                                 preferred_element_type=jnp.float32))  # [tq, d]

    ctx = ctx_parts[0] if len(ctx_parts) == 1 else jnp.concatenate(ctx_parts, axis=-1)
    o_ref[...] = ctx.astype(o_ref.dtype)


def attention(q2d, k2d, v2d, mask2d, *, batch, seq, num_heads, head_dim,
              scale, budget):
    """q2d/k2d/v2d: [B*S, H]; mask2d: [B, S] additive. Returns context [B*S, H]."""
    n, h = q2d.shape
    isz = jnp.dtype(q2d.dtype).itemsize

    # heads per grid step: make the column window >= 128 lanes where possible
    hb = num_heads
    for cand in range(max(1, -(-128 // head_dim)), num_heads + 1):
        if num_heads % cand == 0 and ((cand * head_dim) % 128 == 0
                                      or cand * head_dim == h):
            hb = cand
            break
    hbd = hb * head_dim

    def footprint(tq_):
        io = 2 * (2 * tq_ * hbd + 2 * seq * hbd) * isz + 2 * seq * 4  # q/out + k/v + mask
        tmp = 3 * tq_ * seq * 4 + 2 * tq_ * hbd * 4                   # f32 scores + ctx
        return io + tmp

    # query tile: largest divisor of S whose score tiles fit the VMEM budget
    candidates = []
    for t in (seq, 1024, 512, 256, 128):
        if 0 < t <= seq and seq % t == 0 and t not in candidates:
            candidates.append(t)
    tq = candidates[-1]
    for t in candidates:
        if footprint(t) + (8 << 20) <= budget:
            tq = t
            break
    q_blocks = seq // tq

    q_spec = pl.BlockSpec((tq, hbd), lambda bi, hblk, qi: (bi * q_blocks + qi, hblk))
    kv_spec = pl.BlockSpec((seq, hbd), lambda bi, hblk, qi: (bi, hblk))
    mask_spec = pl.BlockSpec((1, seq), lambda bi, hblk, qi: (bi, 0))

    return pl.pallas_call(
        functools.partial(_attention_kernel, heads_per_block=hb,
                          head_dim=head_dim, scale=float(scale)),
        out_shape=jax.ShapeDtypeStruct((n, h), q2d.dtype),
        grid_spec=pltpu.PrefetchScalarGridSpec(
            num_scalar_prefetch=0,
            grid=(batch, num_heads // hb, q_blocks),
            in_specs=[q_spec, kv_spec, kv_spec, mask_spec],
            out_specs=q_spec,
        ),
        compiler_params=pltpu.CompilerParams(
            dimension_semantics=("parallel", "parallel", "arbitrary"),
            vmem_limit_bytes=_vmem_limit(footprint(tq), budget)),
    )(q2d, k2d, v2d, mask2d)


# ---------------------------------------------------------------------------
# kernel 3: BertSelfOutput (dense -> dropout(identity) -> +residual -> LayerNorm)
# ---------------------------------------------------------------------------
def _self_output_kernel(x_ref, res_ref, w_ref, b_ref, g_ref, beta_ref, o_ref,
                        *, inv_hidden):
    y = jnp.dot(x_ref[...], w_ref[...], preferred_element_type=jnp.float32)
    y = y + b_ref[...].astype(jnp.float32)

    # TODO(synk): hidden-states dropout is identity at inference (no RNG mask).

    y = y + res_ref[...].astype(jnp.float32)

    # LayerNorm over the hidden axis, eps = 1e-12, f32 epilogue
    mean = jnp.sum(y, axis=-1, keepdims=True) * inv_hidden
    c = y - mean
    var = jnp.sum(c * c, axis=-1, keepdims=True) * inv_hidden
    out = c * jax.lax.rsqrt(var + 1e-12)
    out = out * g_ref[...].astype(jnp.float32) + beta_ref[...].astype(jnp.float32)
    o_ref[...] = out.astype(o_ref.dtype)


def self_output(hidden_states, input_tensor, w_t, bias, gamma, beta,
                *, budget, row_block=512):
    """hidden_states/input_tensor: [N, H]; w_t: [H, H] in [in, out] layout."""
    n, h = hidden_states.shape
    isz = jnp.dtype(hidden_states.dtype).itemsize
    sub = _sublane(hidden_states.dtype)
    w_bytes = 2 * (h * h + 3 * h) * isz

    def footprint(rb):
        act = 2 * (2 * rb * h + rb * h) * isz  # x + residual + out tiles (2-buf)
        tmp = 3 * rb * h * 4                   # f32 y / centered / scaled intermediates
        return w_bytes + act + tmp

    rb = _fit_row_block(n, sub, row_block, footprint, budget)

    row_spec = pl.BlockSpec((rb, h), lambda i: (i, 0))
    w_spec = pl.BlockSpec((h, h), lambda i: (0, 0))
    vec_spec = pl.BlockSpec((1, h), lambda i: (0, 0))

    return pl.pallas_call(
        functools.partial(_self_output_kernel, inv_hidden=1.0 / h),
        out_shape=jax.ShapeDtypeStruct((n, h), hidden_states.dtype),
        grid_spec=pltpu.PrefetchScalarGridSpec(
            num_scalar_prefetch=0,
            grid=(pl.cdiv(n, rb),),
            in_specs=[row_spec, row_spec, w_spec, vec_spec, vec_spec, vec_spec],
            out_specs=row_spec,
        ),
        compiler_params=pltpu.CompilerParams(
            dimension_semantics=("parallel",),
            vmem_limit_bytes=_vmem_limit(footprint(rb), budget)),
    )(hidden_states, input_tensor, w_t,
      bias.reshape(1, h), gamma.reshape(1, h), beta.reshape(1, h))


# ---------------------------------------------------------------------------
# full BertAttention forward
# ---------------------------------------------------------------------------
def bert_attention(hidden_states, attention_mask, params, *, num_heads):
    """hidden_states: [B, S, H]; attention_mask: [B, 1, 1, S] additive mask.

    Weights are in the PyTorch nn.Linear [out, in] layout; they are transposed
    once here (static, tiny vs. activations) so every kernel matmul contracts
    dim 0 of the RHS.
    """
    b, s, h = hidden_states.shape
    d = h // num_heads
    n = b * s
    if s % 8 != 0 and b != 1:
        raise ValueError("flat-layout attention requires seq to be a multiple of 8")

    budget = _vmem_budget()
    x2d = hidden_states.reshape(n, h)

    wq_t = jnp.transpose(params["wq"])
    wk_t = jnp.transpose(params["wk"])
    wv_t = jnp.transpose(params["wv"])
    wo_t = jnp.transpose(params["wo"])

    # Q / K / V projections (fused kernel) -> flat [N, H] buffers
    q2d, k2d, v2d = qkv_projection(
        x2d, wq_t, params["bq"], wk_t, params["bk"], wv_t, params["bv"],
        budget=budget)

    # attention consumes the flat layout directly; no head transposes anywhere
    mask2d = attention_mask.reshape(b, s)
    ctx2d = attention(q2d, k2d, v2d, mask2d, batch=b, seq=s,
                      num_heads=num_heads, head_dim=d,
                      scale=1.0 / math.sqrt(d), budget=budget)

    out2d = self_output(ctx2d, x2d, wo_t, params["bo"],
                        params["gamma"], params["beta"], budget=budget)
    return out2d.reshape(b, s, h)


# ---------------------------------------------------------------------------
# plain-JAX reference (for the sanity check)
# ---------------------------------------------------------------------------
def bert_attention_reference(x, ext_mask, p, num_heads):
    b, s, h = x.shape
    d = h // num_heads

    def linear(t, w, bias):
        return t @ w.T + bias

    def heads(t):
        return t.reshape(b, s, num_heads, d).transpose(0, 2, 1, 3)

    q = heads(linear(x, p["wq"], p["bq"]))
    k = heads(linear(x, p["wk"], p["bk"]))
    v = heads(linear(x, p["wv"], p["bv"]))
    scores = jnp.einsum("bhqd,bhkd->bhqk", q, k) / math.sqrt(d) + ext_mask
    probs = jax.nn.softmax(scores, axis=-1)
    ctx = jnp.einsum("bhqk,bhkd->bhqd", probs, v)
    ctx = ctx.transpose(0, 2, 1, 3).reshape(b, s, h)
    y = linear(ctx, p["wo"], p["bo"]) + x
    mu = y.mean(-1, keepdims=True)
    var = ((y - mu) ** 2).mean(-1, keepdims=True)
    return (y - mu) / jnp.sqrt(var + 1e-12) * p["gamma"] + p["beta"]


if __name__ == "__main__":
    batch, seq, hidden, num_heads = 2, 8, 32, 4

    key = jax.random.PRNGKey(0)
    keys = jax.random.split(key, 12)

    hidden_states = jax.random.normal(keys[0], (batch, seq, hidden), dtype=jnp.float32)

    params = {
        "wq": jax.random.normal(keys[1], (hidden, hidden), jnp.float32) * 0.02,
        "bq": jax.random.normal(keys[2], (hidden,), jnp.float32) * 0.02,
        "wk": jax.random.normal(keys[3], (hidden, hidden), jnp.float32) * 0.02,
        "bk": jax.random.normal(keys[4], (hidden,), jnp.float32) * 0.02,
        "wv": jax.random.normal(keys[5], (hidden, hidden), jnp.float32) * 0.02,
        "bv": jax.random.normal(keys[6], (hidden,), jnp.float32) * 0.02,
        "wo": jax.random.normal(keys[7], (hidden, hidden), jnp.float32) * 0.02,
        "bo": jax.random.normal(keys[8], (hidden,), jnp.float32) * 0.02,
        "gamma": 1.0 + 0.01 * jax.random.normal(keys[9], (hidden,), jnp.float32),
        "beta": 0.01 * jax.random.normal(keys[10], (hidden,), jnp.float32),
    }

    # BERT-style additive attention mask: mask out the last 2 keys of batch 1.
    valid = jnp.ones((batch, seq), dtype=jnp.float32)
    valid = valid.at[1, -2:].set(0.0)
    attention_mask = ((1.0 - valid) * -10000.0).reshape(batch, 1, 1, seq)

    out = bert_attention(hidden_states, attention_mask, params,
                         num_heads=num_heads)
    jax.block_until_ready(out)

    ref = bert_attention_reference(hidden_states, attention_mask, params, num_heads)
    max_err = float(jnp.max(jnp.abs(out - ref)))
    assert max_err < 2e-3, f"max abs error {max_err}"

    print("KERNEL_OK")
</pallas_src>

<mosaic_0001>
module attributes {stable_mosaic.version = 11 : i64} {
  func.func @_qkv_kernel(%arg0: i32, %arg1: memref<16x32xf32, #tpu.memory_space<vmem>>, %arg2: memref<32x32xf32, #tpu.memory_space<vmem>>, %arg3: memref<1x32xf32, #tpu.memory_space<vmem>>, %arg4: memref<32x32xf32, #tpu.memory_space<vmem>>, %arg5: memref<1x32xf32, #tpu.memory_space<vmem>>, %arg6: memref<32x32xf32, #tpu.memory_space<vmem>>, %arg7: memref<1x32xf32, #tpu.memory_space<vmem>>, %arg8: memref<16x32xf32, #tpu.memory_space<vmem>>, %arg9: memref<16x32xf32, #tpu.memory_space<vmem>>, %arg10: memref<16x32xf32, #tpu.memory_space<vmem>>) attributes {dimension_semantics = [#tpu.dimension_semantics<parallel>], iteration_bounds = array<i64: 1>, scalar_prefetch = 0 : i64, scratch_operands = 0 : i64, tpu.core_type = #tpu.core_type<tc>, window_params = [{transform_indices = @transform_0, window_bounds = array<i64: 16, 32>}, {pipeline_mode = #tpu.pipeline_mode<synchronous>, transform_indices = @transform_1, window_bounds = array<i64: 32, 32>}, {pipeline_mode = #tpu.pipeline_mode<synchronous>, transform_indices = @transform_2, window_bounds = array<i64: 1, 32>}, {pipeline_mode = #tpu.pipeline_mode<synchronous>, transform_indices = @transform_3, window_bounds = array<i64: 32, 32>}, {pipeline_mode = #tpu.pipeline_mode<synchronous>, transform_indices = @transform_4, window_bounds = array<i64: 1, 32>}, {pipeline_mode = #tpu.pipeline_mode<synchronous>, transform_indices = @transform_5, window_bounds = array<i64: 32, 32>}, {pipeline_mode = #tpu.pipeline_mode<synchronous>, transform_indices = @transform_6, window_bounds = array<i64: 1, 32>}, {transform_indices = @transform_7, window_bounds = array<i64: 16, 32>}, {transform_indices = @transform_8, window_bounds = array<i64: 16, 32>}, {transform_indices = @transform_9, window_bounds = array<i64: 16, 32>}]} {
    %c0 = arith.constant 0 : index
    %c0_0 = arith.constant 0 : index
    %0 = vector.load %arg1[%c0, %c0_0] : memref<16x32xf32, #tpu.memory_space<vmem>>, vector<16x32xf32>
    %c0_1 = arith.constant 0 : index
    %c0_2 = arith.constant 0 : index
    %1 = vector.load %arg2[%c0_1, %c0_2] : memref<32x32xf32, #tpu.memory_space<vmem>>, vector<32x32xf32>
    %cst = arith.constant dense<0.000000e+00> : vector<16x32xf32>
    %2 = tpu.matmul %0, %1, %cst {dimension_numbers = #tpu.dot_dimension_numbers<[1], [0], [0], [1], [0, 0, 1, 1], [], []>} : vector<16x32xf32>, vector<32x32xf32>, vector<16x32xf32> -> vector<16x32xf32>
    %c0_3 = arith.constant 0 : index
    %c0_4 = arith.constant 0 : index
    %3 = vector.load %arg3[%c0_3, %c0_4] : memref<1x32xf32, #tpu.memory_space<vmem>>, vector<1x32xf32>
    %4 = vector.broadcast %3 : vector<1x32xf32> to vector<16x32xf32>
    %5 = arith.addf %2, %4 : vector<16x32xf32>
    %c0_5 = arith.constant 0 : index
    %c0_6 = arith.constant 0 : index
    %6 = vector.load %arg8[%c0_5, %c0_6] : memref<16x32xf32, #tpu.memory_space<vmem>>, vector<16x32xf32>
    tpu.vector_store %arg8[%c0_5, %c0_6], %5 {strides = array<i32>} : memref<16x32xf32, #tpu.memory_space<vmem>>, vector<16x32xf32>,
    %c0_7 = arith.constant 0 : index
    %c0_8 = arith.constant 0 : index
    %7 = vector.load %arg4[%c0_7, %c0_8] : memref<32x32xf32, #tpu.memory_space<vmem>>, vector<32x32xf32>
    %cst_9 = arith.constant dense<0.000000e+00> : vector<16x32xf32>
    %8 = tpu.matmul %0, %7, %cst_9 {dimension_numbers = #tpu.dot_dimension_numbers<[1], [0], [0], [1], [0, 0, 1, 1], [], []>} : vector<16x32xf32>, vector<32x32xf32>, vector<16x32xf32> -> vector<16x32xf32>
    %c0_10 = arith.constant 0 : index
    %c0_11 = arith.constant 0 : index
    %9 = vector.load %arg5[%c0_10, %c0_11] : memref<1x32xf32, #tpu.memory_space<vmem>>, vector<1x32xf32>
    %10 = vector.broadcast %9 : vector<1x32xf32> to vector<16x32xf32>
    %11 = arith.addf %8, %10 : vector<16x32xf32>
    %c0_12 = arith.constant 0 : index
    %c0_13 = arith.constant 0 : index
    %12 = vector.load %arg9[%c0_12, %c0_13] : memref<16x32xf32, #tpu.memory_space<vmem>>, vector<16x32xf32>
    tpu.vector_store %arg9[%c0_12, %c0_13], %11 {strides = array<i32>} : memref<16x32xf32, #tpu.memory_space<vmem>>, vector<16x32xf32>,
    %c0_14 = arith.constant 0 : index
    %c0_15 = arith.constant 0 : index
    %13 = vector.load %arg6[%c0_14, %c0_15] : memref<32x32xf32, #tpu.memory_space<vmem>>, vector<32x32xf32>
    %cst_16 = arith.constant dense<0.000000e+00> : vector<16x32xf32>
    %14 = tpu.matmul %0, %13, %cst_16 {dimension_numbers = #tpu.dot_dimension_numbers<[1], [0], [0], [1], [0, 0, 1, 1], [], []>} : vector<16x32xf32>, vector<32x32xf32>, vector<16x32xf32> -> vector<16x32xf32>
    %c0_17 = arith.constant 0 : index
    %c0_18 = arith.constant 0 : index
    %15 = vector.load %arg7[%c0_17, %c0_18] : memref<1x32xf32, #tpu.memory_space<vmem>>, vector<1x32xf32>
    %16 = vector.broadcast %15 : vector<1x32xf32> to vector<16x32xf32>
    %17 = arith.addf %14, %16 : vector<16x32xf32>
    %c0_19 = arith.constant 0 : index
    %c0_20 = arith.constant 0 : index
    %18 = vector.load %arg10[%c0_19, %c0_20] : memref<16x32xf32, #tpu.memory_space<vmem>>, vector<16x32xf32>
    tpu.vector_store %arg10[%c0_19, %c0_20], %17 {strides = array<i32>} : memref<16x32xf32, #tpu.memory_space<vmem>>, vector<16x32xf32>,
    return
  }
  func.func @transform_0(%arg0: i32) -> (i32, i32) {
    %c0_i32 = arith.constant 0 : i32
    %c0_i32_0 = arith.constant 0 : i32
    return %arg0, %c0_i32 : i32, i32
  }
  func.func @transform_1(%arg0: i32) -> (i32, i32) {
    %c0_i32 = arith.constant 0 : i32
    %c0_i32_0 = arith.constant 0 : i32
    %c0_i32_1 = arith.constant 0 : i32
    return %c0_i32, %c0_i32_0 : i32, i32
  }
  func.func @transform_2(%arg0: i32) -> (i32, i32) {
    %c0_i32 = arith.constant 0 : i32
    %c0_i32_0 = arith.constant 0 : i32
    %c0_i32_1 = arith.constant 0 : i32
    return %c0_i32, %c0_i32_0 : i32, i32
  }
  func.func @transform_3(%arg0: i32) -> (i32, i32) {
    %c0_i32 = arith.constant 0 : i32
    %c0_i32_0 = arith.constant 0 : i32
    %c0_i32_1 = arith.constant 0 : i32
    return %c0_i32, %c0_i32_0 : i32, i32
  }
  func.func @transform_4(%arg0: i32) -> (i32, i32) {
    %c0_i32 = arith.constant 0 : i32
    %c0_i32_0 = arith.constant 0 : i32
    %c0_i32_1 = arith.constant 0 : i32
    return %c0_i32, %c0_i32_0 : i32, i32
  }
  func.func @transform_5(%arg0: i32) -> (i32, i32) {
    %c0_i32 = arith.constant 0 : i32
    %c0_i32_0 = arith.constant 0 : i32
    %c0_i32_1 = arith.constant 0 : i32
    return %c0_i32, %c0_i32_0 : i32, i32
  }
  func.func @transform_6(%arg0: i32) -> (i32, i32) {
    %c0_i32 = arith.constant 0 : i32
    %c0_i32_0 = arith.constant 0 : i32
    %c0_i32_1 = arith.constant 0 : i32
    return %c0_i32, %c0_i32_0 : i32, i32
  }
  func.func @transform_7(%arg0: i32) -> (i32, i32) {
    %c0_i32 = arith.constant 0 : i32
    %c0_i32_0 = arith.constant 0 : i32
    return %arg0, %c0_i32 : i32, i32
  }
  func.func @transform_8(%arg0: i32) -> (i32, i32) {
    %c0_i32 = arith.constant 0 : i32
    %c0_i32_0 = arith.constant 0 : i32
    return %arg0, %c0_i32 : i32, i32
  }
  func.func @transform_9(%arg0: i32) -> (i32, i32) {
    %c0_i32 = arith.constant 0 : i32
    %c0_i32_0 = arith.constant 0 : i32
    return %arg0, %c0_i32 : i32, i32
  }
}

</mosaic_0001>

<bundles_post_ra>
// kernel: tpu_custom_call.1
= control target key start
LH: loop header
LB: loop body
LE: loop exit
PB: predicated region body
PF: predicated region fallthrough
CT: control target
= control target key end

     0   :  { %15 = vsyncpa [#allocation3], 0  ;;  %s872_s0 = inlined_call_operand.hbm [shape: f32[16,32], index: 0, kind: input, shape index: {}]   ;;  %s873_s1 = inlined_call_operand.hbm [shape: f32[32,32], index: 1, kind: input, shape index: {}]   ;;  %s874_s2 = inlined_call_operand.vmem [shape: f32[1,32], index: 2, kind: input, shape index: {}]   ;;  %s875_s3 = inlined_call_operand.hbm [shape: f32[32,32], index: 3, kind: input, shape index: {}]   ;;  %s876_s4 = inlined_call_operand.vmem [shape: f32[1,32], index: 4, kind: input, shape index: {}]   ;;  %s877_s5 = inlined_call_operand.hbm [shape: f32[32,32], index: 5, kind: input, shape index: {}]   ;;  %s878_s6 = inlined_call_operand.vmem [shape: f32[1,32], index: 6, kind: input, shape index: {}]   ;;  %s879_s7 = inlined_call_operand.hbm [shape: f32[16,32], index: 7, kind: output, shape index: {0}]   ;;  %s880_s8 = inlined_call_operand.hbm [shape: f32[16,32], index: 8, kind: output, shape index: {1}]   ;;  %s881_s9 = inlined_call_operand.hbm [shape: f32[16,32], index: 9, kind: output, shape index: {2}]  }
   0x1   :  { %16 = vsyncpa [#allocation6], 0 }
   0x2   :  { %17 = vsyncpa [#allocation9], 0 }
   0x3   :  { %18 = vsyncpa [#allocation4], 0 }
   0x4   :  { %19 = vsyncpa [#allocation12], 0  ;;  %s666_s30 = smov [#allocation5]   ;;  %s667_s11 = smov [#allocation2]  }
   0x5   :  { %s37_s10 = sshll.u32 %s666_s30, 4  ;;  %s25_s12 = sshll.u32 %s667_s11, 4  ;;  %s38_s10 = int_to_ptr.vmem [resolvable:$true] %s37_s10  ;;  %s725_s12 = int_to_ptr.vmem [resolvable:$true] %s25_s12 }
   0x6   :  { %s502_s15 = scalar_lea.hbm %s873_s1, 512 }
   0x7   :  { %p503_p0 = scmp.ne.s32.totalorder %s873_s1, %s502_s15  ;;  %p506_p1 = scmp.lt.u32.totalorder %s502_s15, %s873_s1 }
   0x9   :  { %p508_p2 = pnand %p506_p1, %p503_p0 }
   0xb   :  { %511 = shalt.err (!%p508_p2)
}
   0xc   :  { %s512_s20 = scalar_lea.vmem %s38_s10, 512  ;;  %p517_p4 = scmp.lt.s32.totalorder %s38_s10, %s38_s10 }
   0xd   :  { %p513_p3 = scmp.ne.s32.totalorder %s38_s10, %s512_s20  ;;  %p518_p5 = scmp.lt.s32.totalorder %s512_s20, %s512_s20 }
   0xf   :  { %p519_p6 = por %p518_p5, %p517_p4 }
  0x11   :  { %p520_p7 = pnand %p519_p6, %p513_p3 }
  0x13   :  { %523 = shalt.err (!%p520_p7)
}
  0x14   :  { %s668_s21 = smov 128   ;;  %s669_s22 = smov 8  }
  0x15   :  { %43 = dma.hbm_to_vmem [thread:$0]  %s873_s1, 512, %s38_s10, [#allocation6], %s668_s21, %s668_s21, %s669_s22  }
  0x16   :  { %s524_s27 = scalar_lea.hbm %s872_s0, 256 }
  0x17   :  { %p525_p8 = scmp.ne.s32.totalorder %s872_s0, %s524_s27  ;;  %p528_p9 = scmp.lt.u32.totalorder %s524_s27, %s872_s0 }
  0x19   :  { %p530_p10 = pnand %p528_p9, %p525_p8 }
  0x1b   :  { %533 = shalt.err (!%p530_p10)
}
  0x1c   :  { %s534_s13 = scalar_lea.vmem %s725_s12, 256  ;;  %p539_p12 = scmp.lt.s32.totalorder %s725_s12, %s725_s12 }
  0x1d   :  { %p535_p11 = scmp.ne.s32.totalorder %s725_s12, %s534_s13  ;;  %p540_p13 = scmp.lt.s32.totalorder %s534_s13, %s534_s13 }
  0x1f   :  { %p541_p0 = por %p540_p13, %p539_p12 }
  0x21   :  { %p542_p1 = pnand %p541_p0, %p535_p11 }
  0x23   :  { %545 = shalt.err (!%p542_p1)
}
  0x24   :  { %31 = dma.hbm_to_vmem [thread:$0]  %s872_s0, 256, %s725_s12, [#allocation3], %s668_s21, %s668_s21, %s669_s22  }
  0x25   :  { %s670_s14 = smov [#allocation7]   ;;  %s671_s16 = smov [#allocation8]  }
  0x26   :  { %s51_s15 = sshll.u32 %s670_s14, 4  ;;  %s65_s17 = sshll.u32 %s671_s16, 4  ;;  %s52_s15 = int_to_ptr.vmem [resolvable:$true] %s51_s15  ;;  %s762_s17 = int_to_ptr.vmem [resolvable:$true] %s65_s17 }
  0x27   :  { %s546_s20 = scalar_lea.hbm %s875_s3, 512 }
  0x28   :  { %p547_p2 = scmp.ne.s32.totalorder %s875_s3, %s546_s20  ;;  %p550_p3 = scmp.lt.u32.totalorder %s546_s20, %s875_s3 }
  0x2a   :  { %p552_p4 = pnand %p550_p3, %p547_p2 }
  0x2c   :  { %555 = shalt.err (!%p552_p4)
}
  0x2d   :  { %s556_s0 = scalar_lea.vmem %s52_s15, 512  ;;  %p561_p6 = scmp.lt.s32.totalorder %s52_s15, %s52_s15 }
  0x2e   :  { %p557_p5 = scmp.ne.s32.totalorder %s52_s15, %s556_s0  ;;  %p562_p7 = scmp.lt.s32.totalorder %s556_s0, %s556_s0 }
  0x30   :  { %p563_p8 = por %p562_p7, %p561_p6 }
  0x32   :  { %p564_p9 = pnand %p563_p8, %p557_p5 }
  0x34   :  { %567 = shalt.err (!%p564_p9)
}
  0x35   :  { %57 = dma.hbm_to_vmem [thread:$0]  %s875_s3, 512, %s52_s15, [#allocation6], %s668_s21, %s668_s21, %s669_s22  }
  0x36   :  { %s568_s30 = scalar_lea.hbm %s877_s5, 512 }
  0x37   :  { %p569_p10 = scmp.ne.s32.totalorder %s877_s5, %s568_s30  ;;  %p572_p11 = scmp.lt.u32.totalorder %s568_s30, %s877_s5 }
  0x39   :  { %p574_p12 = pnand %p572_p11, %p569_p10 }
  0x3b   :  { %577 = shalt.err (!%p574_p12)
}
  0x3c   :  { %s578_s14 = scalar_lea.vmem %s762_s17, 512  ;;  %p583_p0 = scmp.lt.s32.totalorder %s762_s17, %s762_s17 }
  0x3d   :  { %p579_p13 = scmp.ne.s32.totalorder %s762_s17, %s578_s14  ;;  %p584_p1 = scmp.lt.s32.totalorder %s578_s14, %s578_s14 }
  0x3f   :  { %p585_p2 = por %p584_p1, %p583_p0 }
  0x41   :  { %p586_p3 = pnand %p585_p2, %p579_p13 }
  0x43   :  { %589 = shalt.err (!%p586_p3)
}
  0x44   :  { %71 = dma.hbm_to_vmem [thread:$0]  %s877_s5, 512, %s762_s17, [#allocation9], %s668_s21, %s668_s21, %s669_s22  }
  0x45   :  { %656 = dma.done.wait [#allocation3], 256  }
  0x46   :  { %657 = vsyncadd [#allocation3], 4294967040 }
  0x47   :  { %658 = dma.done.wait [#allocation6], 1024  }
  0x48   :  { %659 = vsyncadd [#allocation6], 4294966272 }
  0x49   :  { %660 = dma.done.wait [#allocation9], 512  }
  0x4a   :  { %661 = vsyncadd [#allocation9], 4294966784  ;;  %v88_v0 = vld [vmem:[#allocation5] sm:$0xff]  ;;  %v89_v1 = vld [vmem:[#allocation5 + $0x8] sm:$0xff]  ;;  %vm99_vm0 = vcmask 261120   ;;  %s672_s19 = smov [#allocation10]  }
  0x4b   :  { %v90_v2 = vld [vmem:[#allocation5 + $0x10] sm:$0xff]  ;;  %v469_v3 = vpack.c.bf16 %v89_v1, %v88_v0  ;;  %v91_v4 = vld [vmem:[#allocation5 + $0x18] sm:$0xff]  ;;  %v183_v5 = vld [vmem:[#allocation7] sm:$0xff]  ;;  %s364_s20 = sshll.u32 %s672_s19, 4  ;;  %s673_s23 = smov [#allocation11]   ;;  %s365_s20 = int_to_ptr.vmem [resolvable:$true] %s364_s20 }
  0x4c   :  { %v184_v6 = vld [vmem:[#allocation7 + $0x8] sm:$0xff]  ;;  %v473_v7 = vpack.c.bf16 %v91_v4, %v90_v2  ;;  %v86_v9 = vld [vmem:[#allocation2] sm:$0xff]  ;;  %v271_v10 = vld [vmem:[#allocation8] sm:$0xff]  ;;  %s376_s24 = sshll.u32 %s673_s23, 4  ;;  %s590_s25 = scalar_lea.vmem %s365_s20, 256  ;;  %s812_s24 = int_to_ptr.vmem [resolvable:$true] %s376_s24 }
  0x4d   :  { %v477_v8 = vpack.c.bf16 %v184_v6, %v183_v5  ;;  %470 = vmatprep.subr.bf16.mxu0 %v469_v3  ;;  %444 = vmatprep.mubr.msk.f32.mxu0 %vm99_vm0, %v86_v9  ;;  %v272_v11 = vld [vmem:[#allocation8 + $0x8] sm:$0xff]  ;;  %v185_v12 = vld [vmem:[#allocation7 + $0x10] sm:$0xff]  ;;  %v186_v13 = vld [vmem:[#allocation7 + $0x18] sm:$0xff]  ;;  %p591_p4 = scmp.ne.s32.totalorder %s365_s20, %s590_s25  ;;  %p595_p5 = scmp.lt.s32.totalorder %s365_s20, %s365_s20 }
  0x4e   :  { %472 = vmatpush3.bf16.msra.mxu0 %v469_v3  ;;  %v481_v14 = vpack.c.bf16 %v186_v13, %v185_v12  ;;  %v485_v15 = vpack.c.bf16 %v272_v11, %v271_v10  ;;  %v273_v16 = vld [vmem:[#allocation8 + $0x10] sm:$0xff]  ;;  %v274_v17 = vld [vmem:[#allocation8 + $0x18] sm:$0xff]  ;;  %455 = vmatprep.mubr.msk.f32.mxu1 %vm99_vm0, %v86_v9  ;;  %p596_p6 = scmp.lt.s32.totalorder %s590_s25, %s590_s25 }
  0x4f   :  { %478 = vmatprep.subr.bf16.mxu1 %v477_v8  ;;  %474 = vmatprep.subr.bf16.mxu0 %v473_v7  ;;  %v87_v18 = vld [vmem:[#allocation2 + $0x8] sm:$0xff]  ;;  %v489_v19 = vpack.c.bf16 %v274_v17, %v273_v16  ;;  %v409_v20 = vld [vmem:[%s874_s2] ss:$0 sm:$0xff] }
  0x50   :  { %480 = vmatpush3.bf16.msra.mxu1 %v477_v8  ;;  %v412_v21 = vld [vmem:[%s876_s4] ss:$0 sm:$0xff]  ;;  %p597_p7 = por %p596_p6, %p595_p5 }
  0x51   :  { %482 = vmatprep.subr.bf16.mxu1 %v481_v14  ;;  %v415_v30 = vld [vmem:[%s878_s6] ss:$0 sm:$0xff] }
  0x52   :  { %476 = vmatpush3.bf16.msra.mxu0 %v473_v7  ;;  %p598_p8 = pnand %p597_p7, %p591_p4 }
  0x53   :  { %486 = vmatprep.subr.bf16.mxu0 %v485_v15 }
  0x54   :  { %484 = vmatpush3.bf16.msra.mxu1 %v481_v14 }
  0x55   :  { %445 = vmatmul.mubr.msk.f32.vlgmr.msra.gmra.mrb[0].mxu0 %vm99_vm0, %v87_v18 }
  0x56   :  { %488 = vmatpush3.bf16.msra.mxu0 %v485_v15  ;;  %466 = vmatprep.mubr.msk.f32.mxu0 %vm99_vm0, %v86_v9 }
  0x57   :  { %456 = vmatmul.mubr.msk.f32.vlgmr.msra.gmra.mrb[0].mxu1 %vm99_vm0, %v87_v18  ;;  %490 = vmatprep.subr.bf16.mxu0 %v489_v19 }
  0x5a   :  { %492 = vmatpush3.bf16.msra.mxu0 %v489_v19 }
  0x5d   :  { %467 = vmatmul.mubr.msk.f32.vlgmr.msra.gmra.mrb[2].mxu0 %vm99_vm0, %v87_v18 }
 0x128   :  { %v446_v22 = vpop.f32.mrb[0].mxu0 }
 0x129   :  { %v178_v23 = vadd.f32 %v446_v22, %v409_v20  ;;  %v172_v24 = vpop.f32.mrb[1].mxu0 }
 0x12a   :  { %v457_v25 = vpop.f32.mrb[0].mxu1  ;;  %v173_v26 = vadd.f32 %v409_v20, %v172_v24 }
 0x12b   :  { %v266_v27 = vadd.f32 %v457_v25, %v412_v21  ;;  %v260_v28 = vpop.f32.mrb[1].mxu1  ;;  %182 = vst.msk [vmem:[#allocation10 + $0x8] sm:$0xff] %vm99_vm0, %v178_v23 }
 0x12c   :  { %v261_v29 = vadd.f32 %v412_v21, %v260_v28  ;;  %181 = vst.msk [vmem:[#allocation10] sm:$0xff] %vm99_vm0, %v173_v26 }
 0x12d   :  { %270 = vst.msk [vmem:[#allocation11 + $0x8] sm:$0xff] %vm99_vm0, %v266_v27 }
 0x12e   :  { %269 = vst.msk [vmem:[#allocation11] sm:$0xff] %vm99_vm0, %v261_v29 }
 0x12f   :  { %601 = shalt.err (!%p598_p8)
}
 0x130   :  { %s602_s12 = scalar_lea.hbm %s879_s7, 256 }
 0x131   :  { %p603_p9 = scmp.ne.s32.totalorder %s879_s7, %s602_s12  ;;  %p606_p10 = scmp.lt.u32.totalorder %s602_s12, %s879_s7 }
 0x133   :  { %p608_p11 = pnand %p606_p10, %p603_p9 }
 0x135   :  { %611 = shalt.err (!%p608_p11)
}
 0x136   :  { %370 = dma.vmem_to_hbm [thread:$0]  %s365_s20, 256, %s879_s7, [#allocation4], %s668_s21, %s668_s21, %s669_s22  }
 0x137   :  { %s612_s13 = scalar_lea.vmem %s812_s24, 256  ;;  %p617_p13 = scmp.lt.s32.totalorder %s812_s24, %s812_s24 }
 0x138   :  { %p613_p12 = scmp.ne.s32.totalorder %s812_s24, %s612_s13  ;;  %p618_p0 = scmp.lt.s32.totalorder %s612_s13, %s612_s13 }
 0x13a   :  { %p619_p1 = por %p618_p0, %p617_p13 }
 0x13c   :  { %p620_p2 = pnand %p619_p1, %p613_p12 }
 0x13e   :  { %623 = shalt.err (!%p620_p2)
}
 0x13f   :  { %s624_s14 = scalar_lea.hbm %s880_s8, 256 }
 0x140   :  { %p625_p3 = scmp.ne.s32.totalorder %s880_s8, %s624_s14  ;;  %p628_p4 = scmp.lt.u32.totalorder %s624_s14, %s880_s8 }
 0x142   :  { %p630_p5 = pnand %p628_p4, %p625_p3 }
 0x144   :  { %633 = shalt.err (!%p630_p5)
}
 0x145   :  { %382 = dma.vmem_to_hbm [thread:$0]  %s812_s24, 256, %s880_s8, [#allocation12], %s668_s21, %s668_s21, %s669_s22   ;;  %v468_v31 = vpop.f32.mrb[2].mxu0 }
 0x146   :  { %s674_s18 = smov [#allocation13]   ;;  %v354_v32 = vadd.f32 %v468_v31, %v415_v30  ;;  %v348_v33 = vpop.f32.mrb[3].mxu0 }
 0x147   :  { %s388_s19 = sshll.u32 %s674_s18, 4  ;;  %v349_v34 = vadd.f32 %v415_v30, %v348_v33  ;;  %s389_s19 = int_to_ptr.vmem [resolvable:$true] %s388_s19 }
 0x148   :  { %358 = vst.msk [vmem:[#allocation13 + $0x8] sm:$0xff] %vm99_vm0, %v354_v32  ;;  %s634_s20 = scalar_lea.vmem %s389_s19, 256  ;;  %p639_p7 = scmp.lt.s32.totalorder %s389_s19, %s389_s19 }
 0x149   :  { %357 = vst.msk [vmem:[#allocation13] sm:$0xff] %vm99_vm0, %v349_v34  ;;  %p635_p6 = scmp.ne.s32.totalorder %s389_s19, %s634_s20  ;;  %p640_p8 = scmp.lt.s32.totalorder %s634_s20, %s634_s20 }
 0x14b   :  { %p641_p9 = por %p640_p8, %p639_p7 }
 0x14d   :  { %p642_p10 = pnand %p641_p9, %p635_p6 }
 0x14f   :  { %645 = shalt.err (!%p642_p10)
}
 0x150   :  { %s646_s24 = scalar_lea.hbm %s881_s9, 256 }
 0x151   :  { %p647_p11 = scmp.ne.s32.totalorder %s881_s9, %s646_s24  ;;  %p650_p12 = scmp.lt.u32.totalorder %s646_s24, %s881_s9 }
 0x153   :  { %p652_p13 = pnand %p650_p12, %p647_p11 }
 0x155   :  { %655 = shalt.err (!%p652_p13)
}
 0x156   :  { %394 = dma.vmem_to_hbm [thread:$0]  %s389_s19, 256, %s881_s9, [#allocation12], %s668_s21, %s668_s21, %s669_s22  }
 0x157   :  { %662 = dma.done.wait [#allocation4], 256  }
 0x158   :  { %663 = vsyncadd [#allocation4], 4294967040 }
 0x159   :  { %664 = dma.done.wait [#allocation12], 512  }
 0x15a   :  { %665 = vsyncadd [#allocation12], 4294966784 }
 0x15b   :  { %404 = vsyncpa [#allocation3], 1 }
 0x15c   :  { %405 = vsyncpa [#allocation6], 1 }
 0x15d   :  { %406 = vsyncpa [#allocation9], 1 }
 0x15e   :  { %407 = vsyncpa [#allocation4], 1 }
 0x15f   :  { %408 = vsyncpa [#allocation12], 1 }

</bundles_post_ra>
